<compile_context>
chip_gen: v5e
topology: v5e:2x2
jax: 0.10.0
libtpu: 0.0.40
codegen_flags: <defaults>
</compile_context>

<pallas_src>
import functools
import math

import jax
import jax.numpy as jnp
from jax import lax
from jax.experimental import pallas as pl
from jax.experimental.pallas import tpu as pltpu


def _barlow_kernel(z1_ref, z2_ref, out_ref, *, inv_temp, tm, full_h):
    j = pl.program_id(1)

    z1 = z1_ref[...]                       # (tb, S, H)  native layout, H lane-dense
    z2 = z2_ref[...]                       # (tb, S, TM) native layout, TM lane-dense

    # Canonical batched MXU matmul: transpose LHS tile in-register (XLU slot, overlaps
    # with MXU/EUP), then contract LHS last dim against RHS second-to-last dim.
    #   logits[t, n, m] = (1/T) * sum_s z1[t, s, n] * z2[t, s, m]
    z1t = jnp.swapaxes(z1, 1, 2)           # (tb, H, S)
    g = lax.dot_general(
        z1t, z2,
        dimension_numbers=(((2,), (1,)), ((0,), (0,))),
        preferred_element_type=jnp.float32,
    ) * inv_temp                            # (tb, H, TM) f32 accumulation

    # Numerically stable log-sum-exp over the class axis n (axis 1).
    m = jnp.max(g, axis=1, keepdims=True)                                # (tb, 1, TM)
    lse = jnp.log(jnp.sum(jnp.exp(g - m), axis=1, keepdims=True)) + m    # (tb, 1, TM)

    # Diagonal (label) logits for the columns of this m-block:
    #   sum_{m in block} logits[t, m, m] == (1/T) * sum_{s, m in block} z1[t, s, m] * z2[t, s, m]
    # Exact, O(S*TM), reuses tiles already resident in VMEM; accumulated in f32 so it
    # stays consistent with the f32 MXU accumulation even for bf16 inputs.
    if tm == full_h:
        z1_cols = z1
    else:
        col0 = pl.multiple_of(j * tm, tm)          # 128-aligned dynamic lane slice
        z1_cols = z1_ref[:, :, pl.ds(col0, tm)]    # (tb, S, TM)
    trace = jnp.sum(z1_cols.astype(jnp.float32) * z2.astype(jnp.float32)) * inv_temp

    partial = jnp.sum(lse) - trace

    # Lane-dense, unmasked full-vreg store of this block's partial loss.
    out_ref[...] = jnp.full(out_ref.shape, partial, dtype=out_ref.dtype)


def _cdiv(a, b):
    return -(-a // b)


def _vmem_capacity_bytes():
    try:
        return int(pltpu.get_tpu_info().vmem_capacity_bytes)
    except Exception:
        return 64 * 1024 * 1024  # conservative (v7x-sized) fallback


def _pick_col_tile(H, max_tm=512):
    """Column (m) tile: multiple of 128 dividing H, else full extent (lane constraint)."""
    if H % 128 != 0:
        return H
    tm = 128
    while tm * 2 <= max_tm and H % (tm * 2) == 0:
        tm *= 2
    return tm


def _pick_batch_block(B, S, H, TM, in_bytes, budget_bytes):
    """Largest batch block whose per-step working set fits the VMEM budget."""
    def bytes_needed(tb):
        inputs = 2 * tb * S * H * in_bytes + 2 * tb * S * TM * in_bytes  # double-buffered z1, z2
        work = 3 * tb * H * TM * 4 + tb * H * S * 4                      # logits/exp/lhs-transpose (f32)
        out = 2 * 8 * 128 * 4
        return inputs + work + out

    tb = B
    while tb > 1 and bytes_needed(tb) > budget_bytes:
        tb -= 1
    return max(tb, 1)


def barlow_twins_pallas(z1, z2, temperature: float = 1.0):
    assert z1.ndim == 3 and z1.shape == z2.shape
    B, S, H = z1.shape

    # Keep the native dtype: bf16 inputs go straight to the MXU (f32 accumulation);
    # f32 inputs keep full precision to match the reference semantics.
    in_dtype = jnp.promote_types(z1.dtype, z2.dtype)
    z1 = z1.astype(in_dtype)
    z2 = z2.astype(in_dtype)
    in_bytes = jnp.dtype(in_dtype).itemsize

    # Generation-aware VMEM sizing (v5e/v6e: 128 MiB physical, v7x: 64 MiB).
    vmem_cap = _vmem_capacity_bytes()
    vmem_limit = min(int(vmem_cap * 0.75), 96 * 1024 * 1024)
    budget = int(vmem_limit * 0.6)

    TM = _pick_col_tile(H)
    num_m = H // TM

    tb = _pick_batch_block(B, S, H, TM, in_bytes, budget)
    # Give the v7x megacore at least 2 parallel grid steps when possible.
    if B > 1 and _cdiv(B, tb) * num_m < 2:
        tb = _cdiv(B, 2)

    num_b = _cdiv(B, tb)
    B_pad = num_b * tb
    n_pad = B_pad - B
    if n_pad:
        pad = jnp.zeros((n_pad, S, H), dtype=in_dtype)
        z1 = jnp.concatenate([z1, pad], axis=0)
        z2 = jnp.concatenate([z2, pad], axis=0)

    kernel = functools.partial(
        _barlow_kernel, inv_temp=1.0 / float(temperature), tm=TM, full_h=H)

    partials = pl.pallas_call(
        kernel,
        out_shape=jax.ShapeDtypeStruct((num_b, num_m, 8, 128), jnp.float32),
        grid_spec=pltpu.PrefetchScalarGridSpec(
            num_scalar_prefetch=0,
            grid=(num_b, num_m),
            in_specs=[
                # z1 block is independent of the (fast) m axis -> stays resident, no re-DMA.
                pl.BlockSpec((tb, S, H), lambda g, j: (g, 0, 0)),
                pl.BlockSpec((tb, S, TM), lambda g, j: (g, 0, j)),
            ],
            out_specs=pl.BlockSpec((1, 1, 8, 128), lambda g, j: (g, j, 0, 0)),
        ),
        compiler_params=pltpu.CompilerParams(
            # Each grid step writes a distinct output block; no cross-step state.
            dimension_semantics=("parallel", "parallel"),
            vmem_limit_bytes=vmem_limit,
        ),
    )(z1, z2)

    # Final reduction + mean scaling done in XLA outside the kernel.
    total = jnp.sum(partials[:, :, 0, 0])
    if n_pad:
        # Each zero-padded batch element contributes exactly H*log(H) to the lse sum
        # (all-zero logits) and zero to the diagonal; remove it exactly.
        total = total - n_pad * H * math.log(H)
    return total / (B * H)


def barlow_twins_ref(z1, z2, temperature: float = 1.0):
    logits = jnp.einsum("bsn,bsm->bnm", z1, z2) / temperature
    lse = jax.scipy.special.logsumexp(logits, axis=1)   # softmax over dim 1 (n)
    diag = jnp.diagonal(logits, axis1=1, axis2=2)
    return jnp.mean(lse - diag)


if __name__ == "__main__":
    key = jax.random.PRNGKey(0)
    k1, k2 = jax.random.split(key)
    B, S, H = 2, 8, 32
    z1 = jax.random.normal(k1, (B, S, H), dtype=jnp.float32)
    z2 = jax.random.normal(k2, (B, S, H), dtype=jnp.float32)

    loss = barlow_twins_pallas(z1, z2, temperature=1.0)
    jax.block_until_ready(loss)

    ref = barlow_twins_ref(z1, z2, temperature=1.0)
    assert jnp.allclose(loss, ref, atol=1e-4, rtol=1e-4), (loss, ref)

    print("KERNEL_OK")
</pallas_src>

<mosaic_0001>
module attributes {stable_mosaic.version = 11 : i64} {
  func.func @_barlow_kernel(%arg0: i32, %arg1: i32, %arg2: memref<1x8x32xf32, #tpu.memory_space<vmem>>, %arg3: memref<1x8x32xf32, #tpu.memory_space<vmem>>, %arg4: memref<1x1x8x128xf32, #tpu.memory_space<vmem>>) attributes {dimension_semantics = [#tpu.dimension_semantics<parallel>, #tpu.dimension_semantics<parallel>], iteration_bounds = array<i64: 2, 1>, scalar_prefetch = 0 : i64, scratch_operands = 0 : i64, tpu.core_type = #tpu.core_type<tc>, window_params = [{transform_indices = @transform_0, window_bounds = array<i64: 1, 8, 32>}, {transform_indices = @transform_1, window_bounds = array<i64: 1, 8, 32>}, {transform_indices = @transform_2, window_bounds = array<i64: 1, 1, 8, 128>}]} {
    %c0 = arith.constant 0 : index
    %c0_0 = arith.constant 0 : index
    %c0_1 = arith.constant 0 : index
    %0 = vector.load %arg2[%c0, %c0_0, %c0_1] : memref<1x8x32xf32, #tpu.memory_space<vmem>>, vector<1x8x32xf32>
    %c0_2 = arith.constant 0 : index
    %c0_3 = arith.constant 0 : index
    %c0_4 = arith.constant 0 : index
    %1 = vector.load %arg3[%c0_2, %c0_3, %c0_4] : memref<1x8x32xf32, #tpu.memory_space<vmem>>, vector<1x8x32xf32>
    %2 = tpu.transpose %0, [0, 2, 1] : vector<1x8x32xf32> -> vector<1x32x8xf32>
    %cst = arith.constant dense<0.000000e+00> : vector<1x32x32xf32>
    %3 = tpu.matmul %2, %1, %cst {dimension_numbers = #tpu.dot_dimension_numbers<[2], [1], [1], [2], [0, 0, 0, 1, 1, 2], [0], [0]>} : vector<1x32x8xf32>, vector<1x8x32xf32>, vector<1x32x32xf32> -> vector<1x32x32xf32>
    %cst_5 = arith.constant 1.000000e+00 : f32
    %4 = vector.broadcast %cst_5 : f32 to vector<1x32x32xf32>
    %5 = arith.mulf %3, %4 : vector<1x32x32xf32>
    %cst_6 = arith.constant dense<0xFF800000> : vector<1x32xf32>
    %6 = vector.multi_reduction <maximumf>, %5, %cst_6 [1] : vector<1x32x32xf32> to vector<1x32xf32>
    %7 = vector.shape_cast %6 : vector<1x32xf32> to vector<1x1x32xf32>
    %8 = vector.broadcast %7 : vector<1x1x32xf32> to vector<1x32x32xf32>
    %9 = arith.subf %5, %8 : vector<1x32x32xf32>
    %10 = math.exp %9 : vector<1x32x32xf32>
    %cst_7 = arith.constant dense<0.000000e+00> : vector<1x32xf32>
    %11 = vector.multi_reduction <add>, %10, %cst_7 [1] : vector<1x32x32xf32> to vector<1x32xf32>
    %12 = vector.shape_cast %11 : vector<1x32xf32> to vector<1x1x32xf32>
    %13 = math.log %12 : vector<1x1x32xf32>
    %14 = arith.addf %13, %7 : vector<1x1x32xf32>
    %15 = arith.mulf %0, %1 : vector<1x8x32xf32>
    %16 = vector.shape_cast %15 : vector<1x8x32xf32> to vector<1x1x8x32xf32>
    %cst_8 = arith.constant dense<0.000000e+00> : vector<1xf32>
    %17 = vector.multi_reduction <add>, %16, %cst_8 [1, 2, 3] : vector<1x1x8x32xf32> to vector<1xf32>
    %18 = vector.shape_cast %17 : vector<1xf32> to vector<1x1x1x1xf32>
    %19 = vector.extract %18[0, 0, 0, 0] : f32 from vector<1x1x1x1xf32>
    %cst_9 = arith.constant 1.000000e+00 : f32
    %20 = arith.mulf %19, %cst_9 : f32
    %21 = vector.shape_cast %14 : vector<1x1x32xf32> to vector<1x1x1x32xf32>
    %cst_10 = arith.constant dense<0.000000e+00> : vector<1xf32>
    %22 = vector.multi_reduction <add>, %21, %cst_10 [1, 2, 3] : vector<1x1x1x32xf32> to vector<1xf32>
    %23 = vector.shape_cast %22 : vector<1xf32> to vector<1x1x1x1xf32>
    %24 = vector.extract %23[0, 0, 0, 0] : f32 from vector<1x1x1x1xf32>
    %25 = arith.subf %24, %20 : f32
    %26 = vector.broadcast %25 : f32 to vector<1x1x8x128xf32>
    %c0_11 = arith.constant 0 : index
    %c0_12 = arith.constant 0 : index
    %c0_13 = arith.constant 0 : index
    %c0_14 = arith.constant 0 : index
    %27 = vector.load %arg4[%c0_11, %c0_12, %c0_13, %c0_14] : memref<1x1x8x128xf32, #tpu.memory_space<vmem>>, vector<1x1x8x128xf32>
    tpu.vector_store %arg4[%c0_11, %c0_12, %c0_13, %c0_14], %26 {strides = array<i32>} : memref<1x1x8x128xf32, #tpu.memory_space<vmem>>, vector<1x1x8x128xf32>,
    return
  }
  func.func @transform_0(%arg0: i32, %arg1: i32) -> (i32, i32, i32) {
    %c0_i32 = arith.constant 0 : i32
    %c0_i32_0 = arith.constant 0 : i32
    %c0_i32_1 = arith.constant 0 : i32
    return %arg0, %c0_i32, %c0_i32_0 : i32, i32, i32
  }
  func.func @transform_1(%arg0: i32, %arg1: i32) -> (i32, i32, i32) {
    %c0_i32 = arith.constant 0 : i32
    %c0_i32_0 = arith.constant 0 : i32
    return %arg0, %c0_i32, %arg1 : i32, i32, i32
  }
  func.func @transform_2(%arg0: i32, %arg1: i32) -> (i32, i32, i32, i32) {
    %c0_i32 = arith.constant 0 : i32
    %c0_i32_0 = arith.constant 0 : i32
    %c0_i32_1 = arith.constant 0 : i32
    return %arg0, %arg1, %c0_i32, %c0_i32_0 : i32, i32, i32, i32
  }
}

</mosaic_0001>

<bundles_post_ra>
// kernel: tpu_custom_call.1
= control target key start
LH: loop header
LB: loop body
LE: loop exit
PB: predicated region body
PF: predicated region fallthrough
CT: control target
= control target key end

     0   :  { %7 = vsyncpa [#allocation3], 0  ;;  %s890_s0 = inlined_call_operand.hbm [shape: f32[2,8,32], index: 0, kind: input, shape index: {}]   ;;  %s891_s1 = inlined_call_operand.hbm [shape: f32[2,8,32], index: 1, kind: input, shape index: {}]   ;;  %s892_s2 = inlined_call_operand.hbm [shape: f32[2,1,8,128], index: 2, kind: output, shape index: {}]  }
   0x1   :  { %9 = vsyncpa [#allocation3 + $0x1], 0 }
   0x2   :  { %10 = vsyncpa [#allocation6], 0 }
   0x3   :  { %12 = vsyncpa [#allocation6 + $0x1], 0 }
   0x4   :  { %13 = vsyncpa [#allocation4], 0 }
   0x5   :  { %15 = vsyncpa [#allocation4 + $0x1], 0  ;;  %s748_s9 = smov 0   ;;  %s750_s10 = smov 0  }
   0x6   :  { %s752_s11 = smov 0   ;;  %s754_s12 = smov 0  }
   0x7   :  { %s756_s13 = smov 0   ;;  %s758_s14 = smov 0  }
   0x8 LB: > { %s480_s15 = sadd.s32 4294967295, %s731_s14   ;;  %s481_s16 = sadd.s32 4294967294, %s731_s14   ;;  %s731_s14 = sphi %s758_s14, %s21_s14   ;;  %s727_s13 = sphi %s756_s13, %s901_s13   ;;  %s723_s12 = sphi %s754_s12, %s900_s12   ;;  %s719_s11 = sphi %s752_s11, %s899_s11   ;;  %s715_s10 = sphi %s750_s10, %s898_s10   ;;  %s711_s9 = sphi %s748_s9, %s897_s9  }
   0x9   : > { %s33_s17 = sadd.s32 1, %s727_s13  ;;  %s40_s18 = sadd.s32 1, %s719_s11 }
   0xa   : > { %p35_p0 = scmp.ge.s32.totalorder %s33_s17, 2  ;;  %p47_p1 = scmp.ne.s32.totalorder %s719_s11, %s715_s10 }
   0xb   : > { %p48_p2 = scmp.eq.s32.totalorder %s731_s14, 0  ;;  %p53_p3 = scmp.ne.s32.totalorder %s715_s10, %s711_s9 }
   0xc   : > { %s903_s17 = smov (%p35_p0, %s33_s17), 0  ;;  %p54_p5 = scmp.eq.s32.totalorder %s480_s15, 0 }
   0xd   : > { %p789_p4 = por %p48_p2, %p47_p1  ;;  %s37_s20 = ssub.s32 %s727_s13, %s903_s17 }
   0xe   : > { %p107_p6 = scmp.eq.s32.totalorder %s480_s15, 1  ;;  %p38_p7 = scmp.eq.s32.totalorder %s37_s20, 0 }
   0xf   : > { %p795_p8 = por %p54_p5, %p53_p3  ;;  %p113_p10 = scmp.eq.s32.totalorder %s481_s16, 1 }
  0x10   : > { %p799_p9 = por %p107_p6, %p47_p1  ;;  %p483_p12 = scmp.ge.s32.totalorder %s731_s14, 2 }
  0x11   : > { %s804_s23 = scalar_select %p38_p7, %s719_s11, %s40_s18  }
  0x12   : > { %p806_p11 = por %p113_p10, %p53_p3  ;;  %p524_p13 = scmp.lt.s32.totalorder %s731_s14, 2 }
  0x13   : > { %s133_s25 = sand.u32 1, %s719_s11   ;;  %s485_s27 = sshll.u32 %s727_s13, 3 }
  0x14   : > { %s484_s26 = sshll.u32 %s133_s25, 3  ;;  %s141_s30 = scalar_lea.hbm %s890_s0, %s485_s27 }
  0x15   : > { %s137_s3 = scalar_lea.vmem [#allocation2], %s484_s26  ;;  %s143_s5 = sshll.u32 %s141_s30, 4  ;;  %s144_s5 = int_to_ptr.hbm [resolvable:$true] %s143_s5 }
  0x16   : > { %s145_s4 = sshll.u32 %s137_s3, 4  ;;  %p514_p0 = pnand %p524_p13, %p789_p4  ;;  %s146_s4 = int_to_ptr.vmem [resolvable:$true] %s145_s4 }
  0x17   : > { %p488_p1 = scmp.ge.s32.totalorder %s731_s14, 1  ;;  %p170_p2 = scmp.lt.s32.totalorder %s731_s14, 3 }
  0x18   : > { %s134_s6 = scalar_lea.sflag [#allocation3], %s133_s25  ;;  %s161_s15 = scalar_lea.hbm %s891_s1, %s485_s27 }
  0x19   : > { %516 = dma.hbm_to_vmem [thread:$0]  (!%p514_p0), %s144_s5, 128, %s146_s4, %s134_s6  }
  0x1a   : > { %p171_p3 = pnand %p488_p1, %p170_p2  ;;  %s156_s16 = scalar_lea.vmem [#allocation5], %s484_s26 }
  0x1b   : > { %s165_s18 = sshll.u32 %s156_s16, 4  ;;  %s163_s20 = sshll.u32 %s161_s15, 4  ;;  %s166_s18 = int_to_ptr.vmem [resolvable:$true] %s165_s18  ;;  %s164_s20 = int_to_ptr.hbm [resolvable:$true] %s163_s20 }
  0x1c   : > { %s153_s28 = scalar_lea.sflag [#allocation6], %s133_s25  ;;  %174 = sbr.rel (%p171_p3) target bundleno = 602 (0x25a), region = 28 }
  0x1d   : > { %519 = dma.hbm_to_vmem [thread:$0]  (!%p514_p0), %s164_s20, 128, %s166_s18, %s153_s28  }
  0x1e   : > { %s825_s19 = sand.u32 (!%p171_p3), 1, %s715_s10  }
  0x1f   : > { %s828_s29 = sshll.u32 (!%p171_p3), %s825_s19, 3  ;;  %s177_s30 = scalar_lea.sflag (!%p171_p3), [#allocation3], %s825_s19 }
  0x20   : > { %s180_s3 = scalar_lea.vmem (!%p171_p3), [#allocation2], %s828_s29 }
  0x21   : > { %698 = dma.done.wait (%p795_p8), %s177_s30, 128  }
  0x22   : > { %700 = vsyncadd (%p795_p8), %s177_s30, 4294967168  ;;  %s187_s25 = scalar_lea.sflag [#allocation6], %s825_s19  ;;  %s190_s26 = scalar_lea.vmem [#allocation5], %s828_s29 }
  0x23   : > { %702 = dma.done.wait (%p795_p8), %s187_s25, 128  }
  0x24   : > { %704 = vsyncadd (%p795_p8), %s187_s25, 4294967168  ;;  %v217_v0 = vld [vmem:[%s180_s3] sm:$0xff]  ;;  %v218_v1 = vld [vmem:[%s190_s26] sm:$0xff]  ;;  %vm251_vm0 = vcmask 64512   ;;  %vm293_vm1 = vcmask 261120   ;;  %vm346_vm2 = vcmask 253952  }
  0x25   : > { %219 = vxpose.xlu0.b32.start.end [1/1] (short) (narrow) %v217_v0, 32  ;;  %v335_v2 = vmul.f32 %v218_v1, %v217_v0  ;;  %279 = vmatpush.msra.mxu0 %v218_v1  ;;  %s497_s21 = sshll.u32 %s723_s12, 3  ;;  %s216_s6 = scalar_lea.vmem [#allocation7], %s828_s29 }
  0x26   : > { %500 = vmatpush.msra.mxu1 %v218_v1  ;;  %501 = vmatpush.msra.mxu2 %v218_v1  ;;  %s372_s5 = scalar_lea.hbm %s892_s2, %s497_s21  ;;  %s374_s7 = sshll.u32 %s216_s6, 4  ;;  %s375_s7 = int_to_ptr.vmem [resolvable:$true] %s374_s7 }
  0x27   : > { %502 = vmatpush.msra.mxu3 %v218_v1  ;;  %v336_v18 = vsel %vm293_vm1, %v335_v2, 0.0  ;;  %s376_s15 = sshll.u32 %s372_s5, 4  ;;  %s361_s20 = scalar_lea.sflag [#allocation4], %s825_s19  ;;  %s377_s15 = int_to_ptr.hbm [resolvable:$true] %s376_s15 }
  0x28   : > { %s659_s28 = sshra.s32 %s377_s15, 4  ;;  %s665_s29 = scalar_lea.hbm %s892_s2, 16  ;;  %s660_s28 = int_to_ptr.hbm [resolvable:$true] %s659_s28 }
  0x29   : > { %s661_s30 = scalar_lea.hbm %s660_s28, 8  ;;  %p666_p7 = scmp.lt.s32.totalorder %s660_s28, %s892_s2 }
  0x2a   : > { %p662_p4 = scmp.ne.s32.totalorder %s660_s28, %s661_s30  ;;  %p667_p8 = scmp.lt.s32.totalorder %s665_s29, %s661_s30 }
  0x2c   : > { %p663_p5 = pnand %p662_p4, %p799_p9  ;;  %p668_p10 = por %p667_p8, %p666_p7 }
  0x2e   : > { %p664_p6 = pneg %p663_p5 }
  0x30   : > { %p669_p13 = pnand %p668_p10, %p664_p6 }
  0xae   : > { %337 = vadd.xlane.f32.xlu0 %v336_v18 }
  0xc9   : > { %v235_v3 = vpop.trf.xlu0 }
  0xca   : > { %492 = vmatmul.msk.f32.vlgmr.msra.gmra.mxu0 %vm251_vm0, %v235_v3 }
  0xd1   : > { %v236_v4 = vpop.trf.xlu0 }
  0xd2   : > { %493 = vmatmul.msk.f32.vlgmr.msra.gmra.mxu1 %vm251_vm0, %v236_v4 }
  0xd9   : > { %v237_v5 = vpop.trf.xlu0 }
  0xda   : > { %494 = vmatmul.msk.f32.vlgmr.msra.gmra.mxu2 %vm251_vm0, %v237_v5 }
  0xe1   : > { %v238_v6 = vpop.trf.xlu0 }
  0xe2   : > { %495 = vmatmul.msk.f32.vlgmr.msra.gmra.mxu3 %vm251_vm0, %v238_v6 }
 0x121   : > { %v338_v54 = vpop.xlane.xlu0 %337 }
 0x122   : > { %v339_v55 = vrot.slane %v338_v54, 4 }
 0x124   : > { %v340_v56 = vadd.f32 %v339_v55, %v338_v54 }
 0x126   : > { %v341_v57 = vrot.slane %v340_v56, 2 }
 0x128   : > { %v342_v58 = vadd.f32 %v341_v57, %v340_v56 }
 0x12a   : > { %v343_v59 = vrot.slane %v342_v58, 1 }
 0x12c   : > { %v344_v60 = vadd.f32 %v343_v59, %v342_v58 }
 0x12e   : > { %503 = vpush %v344_v60 }
 0x147   : > { %v281_v8 = vpop.f32.mrf.mxu0 }
 0x148   : > { %v294_v12 = vsel %vm293_vm1, %v281_v8, -inf }
 0x14f   : > { %v284_v7 = vpop.f32.mrf.mxu1 }
 0x150   : > { %v295_v10 = vsel %vm293_vm1, %v284_v7, -inf }
 0x151   : > { %v298_v15 = vmax.f32 %v294_v12, %v295_v10 }
 0x15d   : > { %v287_v9 = vpop.f32.mrf.mxu2 }
 0x15e   : > { %v296_v13 = vsel %vm293_vm1, %v287_v9, -inf }
 0x15f   : > { %s504_s8 = spop %503 }
 0x165   : > { %v290_v11 = vpop.f32.mrf.mxu3 }
 0x166   : > { %v297_v14 = vsel %vm293_vm1, %v290_v11, -inf }
 0x167   : > { %v299_v16 = vmax.f32 %v296_v13, %v297_v14 }
 0x169   : > { %v300_v17 = vmax.f32 %v298_v15, %v299_v16 }
 0x16b   : > { %v301_v19 = vrot.slane %v300_v17, 4 }
 0x16d   : > { %v302_v20 = vmax.f32 %v300_v17, %v301_v19 }
 0x16f   : > { %v303_v21 = vrot.slane %v302_v20, 2 }
 0x171   : > { %v304_v22 = vmax.f32 %v302_v20, %v303_v21 }
 0x173   : > { %v305_v23 = vrot.slane %v304_v22, 1 }
 0x175   : > { %v306_v24 = vmax.f32 %v304_v22, %v305_v23 }
 0x177   : > { %v307_v25 = vsub.f32 %v281_v8, %v306_v24  ;;  %v308_v26 = vsub.f32 %v284_v7, %v306_v24  ;;  %v309_v27 = vsub.f32 %v287_v9, %v306_v24  ;;  %v310_v28 = vsub.f32 %v290_v11, %v306_v24 }
 0x179   : > { %v311_v29 = vmul.f32 1.442695, %v307_v25  ;;  %v313_v30 = vmul.f32 1.442695, %v308_v26  ;;  %v315_v31 = vmul.f32 1.442695, %v309_v27 }
 0x17a   : > { %v317_v32 = vmul.f32 1.442695, %v310_v28 }
 0x17b   : > { %575 = vpow2.f32 %v311_v29 }
 0x17c   : > { %577 = vpow2.f32 %v313_v30 }
 0x17d   : > { %579 = vpow2.f32 %v315_v31 }
 0x17e   : > { %581 = vpow2.f32 %v317_v32 }
 0x181   : > { %v576_v33 = vpop.eup %575 }
 0x182   : > { %v578_v34 = vpop.eup %577  ;;  %v319_v35 = vsel %vm293_vm1, %v576_v33, 0.0 }
 0x183   : > { %v580_v36 = vpop.eup %579  ;;  %v320_v37 = vsel %vm293_vm1, %v578_v34, 0.0 }
 0x184   : > { %v582_v38 = vpop.eup %581  ;;  %v321_v39 = vadd.f32 %v320_v37, %v319_v35  ;;  %v322_v40 = vsel %vm293_vm1, %v580_v36, 0.0 }
 0x185   : > { %v324_v42 = vsel %vm293_vm1, %v582_v38, 0.0 }
 0x186   : > { %v323_v41 = vadd.f32 %v322_v40, %v321_v39 }
 0x188   : > { %v325_v43 = vadd.f32 %v324_v42, %v323_v41 }
 0x18a   : > { %v326_v44 = vrot.slane %v325_v43, 4 }
 0x18c   : > { %v327_v45 = vadd.f32 %v326_v44, %v325_v43 }
 0x18e   : > { %v328_v46 = vrot.slane %v327_v45, 2 }
 0x190   : > { %v329_v47 = vadd.f32 %v328_v46, %v327_v45 }
 0x192   : > { %v330_v48 = vrot.slane %v329_v47, 1 }
 0x194   : > { %v331_v49 = vadd.f32 %v330_v48, %v329_v47 }
 0x196   : > { %583 = vlog2.f32 %v331_v49 }
 0x19c   : > { %v584_v50 = vpop.eup %583 }
 0x19d   : > { %v333_v51 = vmul.f32 0.6931472, %v584_v50 }
 0x19f   : > { %v334_v52 = vadd.f32 %v333_v51, %v306_v24 }
 0x1a1   : > { %v347_v53 = vsel %vm346_vm2, %v334_v52, 0.0 }
 0x1a2   : > { %348 = vadd.xlane.f32.xlu1 %v347_v53 }
 0x215   : > { %v349_v61 = vpop.xlane.xlu1 %348 }
 0x216   : > { %v350_v62 = vrot.slane %v349_v61, 4 }
 0x218   : > { %v351_v63 = vadd.f32 %v350_v62, %v349_v61 }
 0x21a   : > { %v352_v0 = vrot.slane %v351_v63, 2 }
 0x21c   : > { %v353_v1 = vadd.f32 %v352_v0, %v351_v63 }
 0x21e   : > { %v354_v2 = vrot.slane %v353_v1, 1 }
 0x220   : > { %v355_v3 = vadd.f32 %v354_v2, %v353_v1 }
 0x222   : > { %505 = vpush %v355_v3 }
 0x253   : > { %s506_s16 = spop %505 }
 0x254   : > { %s357_s18 = ssub.f32 %s506_s16, %s504_s8 }
 0x256   : > { %v358_v4 = vstv %s357_s18 }
 0x257   : > { %359 = vst [vmem:[%s216_s6] sm:$0xff] %v358_v4 }
 0x258   : > { %672 = shalt.err (!%p669_p13)
}
 0x259   : > { %511 = dma.vmem_to_hbm [thread:$0]  (%p799_p9), %s375_s7, 128, %s377_s15, %s361_s20  }
 0x25a PF: > { %s388_s19 = sand.u32 1, %s711_s9   ;;  %p521_p0 = pnand %p483_p12, %p806_p11 }
 0x25b   : > { %s389_s21 = scalar_lea.sflag [#allocation4], %s388_s19 }
 0x25c   : > { %p522_p1 = pneg %p521_p0 }
 0x25e   : > { %706 = dma.done.wait (%p522_p1), %s389_s21, 128  }
 0x25f   : > { %708 = vsyncadd (%p522_p1), %s389_s21, 4294967168  ;;  %s21_s14 = sadd.s32 1, %s731_s14   ;;  %s897_s9 = smov %s715_s10 }
 0x260   : > { %p18_p2 = scmp.ge.s32.totalorder %s21_s14, 4   ;;  %s898_s10 = smov %s719_s11 }
 0x261   : > { %s899_s11 = smov %s804_s23  ;;  %s900_s12 = smov %s727_s13 }
 0x262   : > { %s901_s13 = smov %s903_s17  ;;  %20 = sbr.rel (!%p18_p2) target bundleno = 8 (0x8), region = 86 }
 0x267   :  { %395 = vsyncpa [#allocation3], 1 }
 0x268   :  { %397 = vsyncpa [#allocation3 + $0x1], 1 }
 0x269   :  { %398 = vsyncpa [#allocation6], 1 }
 0x26a   :  { %400 = vsyncpa [#allocation6 + $0x1], 1 }
 0x26b   :  { %401 = vsyncpa [#allocation4], 1 }
 0x26c   :  { %403 = vsyncpa [#allocation4 + $0x1], 1 }

</bundles_post_ra>
